<compile_context>
chip_gen: v7x
topology: tpu7x:2x2x1
jax: 0.10.0
libtpu: 0.0.40
codegen_flags: <defaults>
</compile_context>

<pallas_src>
import numpy as np
import jax
import jax.numpy as jnp
from jax import lax
from jax.experimental import pallas as pl
from jax.experimental.pallas import tpu as pltpu


# int32 two's-complement views of the (uint32) hash constants.
_MIX1 = int(np.array(0x7FEB352D, dtype=np.uint32).view(np.int32))   # lowbias32
_MIX2 = int(np.array(0x846CA68B, dtype=np.uint32).view(np.int32))
_GOLD = int(np.array(0x9E3779B9, dtype=np.uint32).view(np.int32))   # golden ratio


def _dequant_kernel(seed_ref, z_ref, out_ref):
    """out = z + U[0, 1/256); noise keyed on (seed, global element index).

    Counter-based integer hash using only int32 mul/xor/shift/and (arithmetic
    shift + mask == logical shift), so it lowers on Mosaic and in interpret
    mode, is grid-invariant w.r.t. the tiling, and distinct per tile.  Trimmed
    to two mix rounds; the seed and the tile's flat base offset are folded into
    a single scalar add so the per-element VALU cost stays under the per-tile
    DMA budget on v6e/v7x.
    """
    tr, lane = z_ref.shape                       # static block shape
    # One scalar per tile: seed mix + global flat offset of this tile.
    off = seed_ref[0] * _GOLD + pl.program_id(0) * (tr * lane)
    row = lax.broadcasted_iota(jnp.int32, (tr, lane), 0)
    col = lax.broadcasted_iota(jnp.int32, (tr, lane), 1)
    x = row * lane + col + off                   # global flat element index (+seed)
    # lowbias32-style mix, final avalanche round dropped & merged with the mask.
    x = x ^ ((x >> 16) & 0xFFFF)
    x = x * _MIX1
    x = x ^ ((x >> 15) & 0x1FFFF)
    x = x * _MIX2
    bits = x & 0x7FFFFF                          # 23 uniform bits, non-negative
    # Single folded constant: 2^-23 (bits -> [0,1)) * 1/256 (dequant scale).
    noise = bits.astype(jnp.float32) * np.float32(2.0 ** -23 / 256.0)
    out_ref[...] = (z_ref[...].astype(jnp.float32) + noise).astype(out_ref.dtype)


def _pick_layout(n_elems, itemsize):
    """Pick a lane width so z reshapes to (rows, lane) with NO padding.

    Prefers layouts whose row count is sublane-aligned (full-width unmasked
    stores) and splittable into >= 2 grid steps (pipelining / dual-TC sharding).
    Returns (lane, rows, quantum) or None if no lane in the set divides n.
    """
    quantum = max(8, 32 // itemsize)             # 8 f32, 16 bf16, 32 int8/fp8
    best = None
    for lane in (2048, 1024, 512, 256, 128):
        if n_elems % lane:
            continue
        rows = n_elems // lane
        aligned = (rows % quantum == 0)
        splittable = aligned and rows >= 2 * quantum
        key = (splittable, aligned, lane)
        if best is None or key > best[0]:
            best = (key, lane, rows)
    if best is None:
        return None
    return best[1], best[2], quantum


def _choose_tile_rows(rows, lane, quantum, itemsize, target_tile_bytes):
    """Rows per grid step: sublane-aligned, divides rows, >= 2 steps if possible."""
    if rows % quantum != 0:
        return rows                              # single full-extent block
    m = rows // quantum
    cap = max(1, target_tile_bytes // (itemsize * lane * quantum))
    if m >= 2:
        cap = min(cap, m // 2)                   # force >= 2 grid steps
    cap = max(1, min(cap, m))
    d = 1
    for cand in range(cap, 0, -1):               # largest divisor of m <= cap
        if m % cand == 0:
            d = cand
            break
    return d * quantum


def normalizing_flow_forward(z, seed, *, target_tile_bytes=2 << 20):
    """JAX/Pallas equivalent of NormalizingFlow.forward.

    Args:
      z:    (B, C, H, W) float32 input (NCHW, matches PyTorch).
      seed: (1,) int32 seed for the deterministic dequantization noise.
      target_tile_bytes: per-step tile size; 2 MiB is safe on all generations
        (v5e 16 MiB scoped-VMEM default); v7x can use 4 MiB.

    Returns:
      (z_out, log_det) with z_out shaped like z and log_det[0] a (B,) vector
      equal to -log(256) * H * W.
    """
    B = z.shape[0]
    dim_in = int(np.prod(z.shape[-2:]))          # H * W
    orig_shape = z.shape
    n = int(z.size)
    itemsize = z.dtype.itemsize

    layout = _pick_layout(n, itemsize)
    if layout is not None:
        lane, rows, quantum = layout
        z2d = z.reshape(rows, lane)              # pure metadata reshape, no HBM pass
        needs_slice = False
    else:
        # Rare ragged sizes (n % 128 != 0): pad to a (rows, 128) view.
        # This costs one extra HBM pass each way; common image shapes never hit it.
        lane = 128
        quantum = max(8, 32 // itemsize)
        rows = -(-n // lane)
        rows = -(-rows // quantum) * quantum
        z2d = jnp.pad(z.reshape(-1), (0, rows * lane - n)).reshape(rows, lane)
        needs_slice = True

    tile_rows = _choose_tile_rows(rows, lane, quantum, itemsize, target_tile_bytes)
    grid = (rows // tile_rows,)

    out2d = pl.pallas_call(
        _dequant_kernel,
        out_shape=jax.ShapeDtypeStruct((rows, lane), z.dtype),
        grid_spec=pltpu.PrefetchScalarGridSpec(
            num_scalar_prefetch=1,
            grid=grid,
            in_specs=[pl.BlockSpec((tile_rows, lane), lambda i, seed_ref: (i, 0))],
            out_specs=pl.BlockSpec((tile_rows, lane), lambda i, seed_ref: (i, 0)),
        ),
        compiler_params=pltpu.CompilerParams(
            dimension_semantics=("parallel",)),
        input_output_aliases={1: 0},             # z2d -> out (in place when donated)
    )(seed, z2d)

    if needs_slice:
        z_out = out2d.reshape(-1)[:n].reshape(orig_shape)
    else:
        z_out = out2d.reshape(orig_shape)

    # Constant initial log-det term: computed in the wrapper (no kernel output,
    # no sub-lane-width masked store).
    log_det = [jnp.full((B,), -np.log(256.0) * dim_in, dtype=jnp.float32)]

    # TODO(synk): the `blocks` bijector sequence of NormalizingFlow is abstract
    # (no concrete flow-block classes in the source), so the bijector chain is
    # identity and contributes no further log-det terms; likewise the
    # amortized='self'/'input' parameter network + set_parameters path targets
    # those abstract bijectors and is not lowered here (amortized='none' is a
    # no-op in forward()).

    return z_out, log_det


if __name__ == "__main__":
    key = jax.random.PRNGKey(0)
    B, C, H, W = 2, 4, 16, 16
    z = jax.random.normal(key, (B, C, H, W), dtype=jnp.float32)
    seed = jnp.array([0], dtype=jnp.int32)

    z_out, log_det = normalizing_flow_forward(z, seed)
    z_out = jax.block_until_ready(z_out)
    log_det = [jax.block_until_ready(l) for l in log_det]

    # sanity checks
    assert z_out.shape == (B, C, H, W)
    assert log_det[0].shape == (B,)
    expected_ld = -np.log(256.0) * H * W
    assert np.allclose(np.asarray(log_det[0]), expected_ld)
    delta = np.asarray(z_out) - np.asarray(z)
    assert (delta >= 0.0).all() and (delta < 1.0 / 256.0 + 1e-6).all()

    # Multi-tile path (>= 2 pipelined grid steps), distinct noise per tile,
    # and no pad/slice (16384 elements -> un-padded lane-dense view).
    z2 = jax.random.normal(jax.random.PRNGKey(1), (2, 8, 32, 32), jnp.float32)
    z2_out, _ = normalizing_flow_forward(z2, seed)
    z2_out = jax.block_until_ready(z2_out)
    d2 = (np.asarray(z2_out) - np.asarray(z2)).reshape(-1)
    assert (d2 >= 0.0).all() and (d2 < 1.0 / 256.0 + 1e-6).all()
    # different tiles must not reuse the same noise pattern
    assert not np.allclose(d2[: d2.size // 2], d2[d2.size // 2:])

    # Ragged fallback path (n not divisible by 128): padded view, still correct.
    z3 = jax.random.normal(jax.random.PRNGKey(2), (2, 3, 5, 7), jnp.float32)
    z3_out, ld3 = normalizing_flow_forward(z3, seed)
    z3_out = jax.block_until_ready(z3_out)
    d3 = np.asarray(z3_out) - np.asarray(z3)
    assert z3_out.shape == (2, 3, 5, 7)
    assert (d3 >= 0.0).all() and (d3 < 1.0 / 256.0 + 1e-6).all()
    assert np.allclose(np.asarray(ld3[0]), -np.log(256.0) * 5 * 7)

    print("KERNEL_OK")
</pallas_src>

<mosaic_0001>
module attributes {stable_mosaic.version = 11 : i64} {
  func.func @_dequant_kernel(%arg0: i32, %arg1: memref<1xi32, #tpu.memory_space<smem>>, %arg2: memref<8x128xf32, #tpu.memory_space<vmem>>, %arg3: memref<8x128xf32, #tpu.memory_space<vmem>>) attributes {dimension_semantics = [#tpu.dimension_semantics<parallel>], iteration_bounds = array<i64: 2>, scalar_prefetch = 1 : i64, scratch_operands = 0 : i64, tpu.core_type = #tpu.core_type<tc>, window_params = [{transform_indices = @transform_0, window_bounds = array<i64: 8, 128>}, {transform_indices = @transform_1, window_bounds = array<i64: 8, 128>}]} {
    %c0 = arith.constant 0 : index
    %0 = memref.load %arg1[%c0] : memref<1xi32, #tpu.memory_space<smem>>
    %c-1640531527_i32 = arith.constant -1640531527 : i32
    %1 = arith.muli %0, %c-1640531527_i32 : i32
    %c1024_i32 = arith.constant 1024 : i32
    %2 = arith.muli %arg0, %c1024_i32 : i32
    %3 = arith.addi %1, %2 : i32
    %4 = tpu.iota {dimensions = array<i32: 0>} : vector<8x128xi32>
    %5 = tpu.iota {dimensions = array<i32: 1>} : vector<8x128xi32>
    %c128_i32 = arith.constant 128 : i32
    %6 = vector.broadcast %c128_i32 : i32 to vector<8x128xi32>
    %7 = arith.muli %4, %6 : vector<8x128xi32>
    %8 = arith.addi %7, %5 : vector<8x128xi32>
    %9 = vector.broadcast %3 : i32 to vector<8x128xi32>
    %10 = arith.addi %8, %9 : vector<8x128xi32>
    %c16_i32 = arith.constant 16 : i32
    %11 = vector.broadcast %c16_i32 : i32 to vector<8x128xi32>
    %12 = arith.shrsi %10, %11 : vector<8x128xi32>
    %c65535_i32 = arith.constant 65535 : i32
    %13 = vector.broadcast %c65535_i32 : i32 to vector<8x128xi32>
    %14 = arith.andi %12, %13 : vector<8x128xi32>
    %15 = arith.xori %10, %14 : vector<8x128xi32>
    %c2146121005_i32 = arith.constant 2146121005 : i32
    %16 = vector.broadcast %c2146121005_i32 : i32 to vector<8x128xi32>
    %17 = arith.muli %15, %16 : vector<8x128xi32>
    %c15_i32 = arith.constant 15 : i32
    %18 = vector.broadcast %c15_i32 : i32 to vector<8x128xi32>
    %19 = arith.shrsi %17, %18 : vector<8x128xi32>
    %c131071_i32 = arith.constant 131071 : i32
    %20 = vector.broadcast %c131071_i32 : i32 to vector<8x128xi32>
    %21 = arith.andi %19, %20 : vector<8x128xi32>
    %22 = arith.xori %17, %21 : vector<8x128xi32>
    %c-2073254261_i32 = arith.constant -2073254261 : i32
    %23 = vector.broadcast %c-2073254261_i32 : i32 to vector<8x128xi32>
    %24 = arith.muli %22, %23 : vector<8x128xi32>
    %c8388607_i32 = arith.constant 8388607 : i32
    %25 = vector.broadcast %c8388607_i32 : i32 to vector<8x128xi32>
    %26 = arith.andi %24, %25 : vector<8x128xi32>
    %27 = arith.sitofp %26 : vector<8x128xi32> to vector<8x128xf32>
    %cst = arith.constant 4.65661287E-10 : f32
    %28 = vector.broadcast %cst : f32 to vector<8x128xf32>
    %29 = arith.mulf %27, %28 : vector<8x128xf32>
    %c0_0 = arith.constant 0 : index
    %c0_1 = arith.constant 0 : index
    %30 = vector.load %arg2[%c0_0, %c0_1] : memref<8x128xf32, #tpu.memory_space<vmem>>, vector<8x128xf32>
    %31 = arith.addf %30, %29 : vector<8x128xf32>
    %c0_2 = arith.constant 0 : index
    %c0_3 = arith.constant 0 : index
    %32 = vector.load %arg3[%c0_2, %c0_3] : memref<8x128xf32, #tpu.memory_space<vmem>>, vector<8x128xf32>
    tpu.vector_store %arg3[%c0_2, %c0_3], %31 {strides = array<i32>} : memref<8x128xf32, #tpu.memory_space<vmem>>, vector<8x128xf32>,
    return
  }
  func.func @transform_0(%arg0: i32, %arg1: memref<1xi32, #tpu.memory_space<smem>>) -> (i32, i32) {
    %c0_i32 = arith.constant 0 : i32
    %c0_i32_0 = arith.constant 0 : i32
    return %arg0, %c0_i32 : i32, i32
  }
  func.func @transform_1(%arg0: i32, %arg1: memref<1xi32, #tpu.memory_space<smem>>) -> (i32, i32) {
    %c0_i32 = arith.constant 0 : i32
    %c0_i32_0 = arith.constant 0 : i32
    return %arg0, %c0_i32 : i32, i32
  }
}

</mosaic_0001>

<bundles_post_ra>
// kernel: tpu_custom_call.1
= control target key start
LH: loop header
LB: loop body
LE: loop exit
PB: predicated region body
PF: predicated region fallthrough
CT: control target
= control target key end

     0   :  { %s585_s0 = inlined_call_operand.<no memory space> [shape: s32[1], index: 0, kind: input, shape index: {}]   ;;  %s586_s1 = inlined_call_operand.hbm [shape: f32[16,128], index: 1, kind: input, shape index: {}, may-alias: {1,2}]   ;;  %s587_s2 = inlined_call_operand.hbm [shape: f32[16,128], index: 2, kind: output, shape index: {}, may-alias: {1,2}]  }
   0x1   :  { %7 = sst [smem:[#allocation3]] %s585_s0 }
   0x2   :  { %8 = vsyncpa [#allocation5], 0 }
   0x3   :  { %10 = vsyncpa [#allocation5 + $0x1], 0 }
   0x4   :  { %11 = vsyncpa [#allocation6], 0 }
   0x5   :  { %13 = vsyncpa [#allocation6 + $0x1], 0  ;;  %s423_s11 = smov 0   ;;  %s425_s12 = smov 0  }
   0x6   :  { %s427_s13 = smov 0   ;;  %s429_s14 = smov 0  }
   0x7 LB: > { %s444_s0 = sadd.s32 4294967295, %s401_s14   ;;  %s244_s15 = sadd.s32 4294967294, %s401_s14   ;;  %s401_s14 = sphi %s429_s14, %s602_s14   ;;  %s397_s13 = sphi %s427_s13, %s601_s13   ;;  %s393_s12 = sphi %s425_s12, %s600_s12   ;;  %s389_s11 = sphi %s423_s11, %s599_s11  }
   0x8   : > { %s448_s16 = sadd.s32 1, %s401_s14   ;;  %s26_s17 = sadd.s32 1, %s397_s13 }
   0x9   : > { %s23_s18 = ssub.s32 %s401_s14, %s448_s16  ;;  %p33_p0 = scmp.ne.s32.totalorder %s397_s13, %s393_s12 }
   0xa   : > { %p24_p1 = scmp.eq.s32.totalorder %s23_s18, 0  ;;  %p34_p2 = scmp.eq.s32.totalorder %s401_s14, 0 }
   0xb   : > { %p39_p3 = scmp.ne.s32.totalorder %s393_s12, %s389_s11  ;;  %p40_p4 = scmp.eq.s32.totalorder %s444_s0, 0 }
   0xc   : > { %s460_s19 = scalar_select %p24_p1, %s397_s13, %s26_s17  }
   0xd   : > { %p462_p5 = por %p34_p2, %p33_p0  ;;  %p466_p6 = por %p40_p4, %p39_p3 }
   0xe   : > { %p63_p7 = scmp.eq.s32.totalorder %s444_s0, 1  ;;  %p69_p8 = scmp.eq.s32.totalorder %s244_s15, 1 }
   0xf   : > { %p271_p10 = scmp.lt.s32.totalorder %s401_s14, 2  ;;  %s89_s24 = sand.u32 1, %s397_s13  }
  0x10   : > { %p473_p11 = por %p63_p7, %p33_p0  ;;  %p477_p12 = por %p69_p8, %p39_p3 }
  0x11   : > { %s248_s25 = sshll.u32 %s401_s14, 7  ;;  %s247_s26 = sshll.u32 %s89_s24, 3 }
  0x12   : > { %s591_s22 = scalar_select %p473_p11, 1, 0 }
  0x13   : > { %s592_s23 = scalar_select %p477_p12, 1, 0 }
  0x14   : > { %s486_s29 = scalar_lea.hbm %s586_s1, %s248_s25  ;;  %s93_s30 = scalar_lea.vmem [#allocation4], %s247_s26 }
  0x15   : > { %s100_s3 = sshll.u32 %s93_s30, 4  ;;  %p490_p13 = pnand %p271_p10, %p462_p5  ;;  %s494_s3 = int_to_ptr.vmem [resolvable:$true] %s100_s3 }
  0x16   : > { %s90_s5 = scalar_lea.sflag [#allocation5], %s89_s24  ;;  %s305_s6 = scalar_lea.hbm %s486_s29, 128 }
  0x17   : > { %p306_p2 = scmp.ne.s32.totalorder %s486_s29, %s305_s6  ;;  %p307_p3 = pneg %p490_p13 }
  0x18   : > { %s310_s9 = scalar_lea.hbm %s586_s1, 256  ;;  %p311_p5 = scmp.lt.u32.totalorder %s486_s29, %s586_s1 }
  0x19   : > { %p308_p4 = pnand %p307_p3, %p306_p2  ;;  %p312_p8 = scmp.lt.u32.totalorder %s310_s9, %s305_s6 }
  0x1a   : > { %p314_p9 = scmp.lt.u32.totalorder %s305_s6, %s486_s29 }
  0x1b   : > { %p309_p7 = pneg %p308_p4  ;;  %p313_p10 = por %p312_p8, %p311_p5 }
  0x1d   : > { %p315_p0 = por %p314_p9, %p313_p10 }
  0x1f   : > { %p316_p1 = pnand %p315_p0, %p309_p7 }
  0x21   : > { %319 = shalt.err (!%p316_p1)
}
  0x22   : > { %s320_s17 = scalar_lea.vmem %s494_s3, 128  ;;  %s403_s18 = smov [#allocation4]  }
  0x23   : > { %p321_p2 = scmp.ne.s32.totalorder %s494_s3, %s320_s17  ;;  %s325_s20 = sshll.u32 %s403_s18, 4  ;;  %s326_s20 = int_to_ptr.vmem [resolvable:$false] %s325_s20 }
  0x24   : > { %s327_s24 = scalar_lea.vmem %s326_s20, 256  ;;  %p328_p11 = scmp.lt.s32.totalorder %s494_s3, %s326_s20 }
  0x25   : > { %p323_p4 = pnand %p321_p2, %p307_p3  ;;  %p329_p5 = scmp.lt.s32.totalorder %s327_s24, %s320_s17 }
  0x27   : > { %p324_p12 = pneg %p323_p4  ;;  %p330_p8 = por %p329_p5, %p328_p11 }
  0x29   : > { %p331_p9 = pnand %p330_p8, %p324_p12 }
  0x2b   : > { %334 = shalt.err (!%p331_p9)
}
  0x2c   : > { %266 = dma.hbm_to_vmem [thread:$0]  (!%p490_p13), %s486_s29, 128, %s494_s3, %s90_s5  }
  0x2d   : > { %p594_p0 = scmp.lt.s32.totalorder %s401_s14, 3  ;;  %p595_p1 = scmp.ge.s32.totalorder %s401_s14, 1 }
  0x2f   : > { %p106_p3 = pnand %p595_p1, %p594_p0 }
  0x30   : > { %s528_s25 = sand.u32 (!%p106_p3), 1, %s393_s12  }
  0x31   : > { %109 = sbr.rel (%p106_p3) target bundleno = 103 (0x67), region = 24  ;;  %s250_s26 = sshll.u32 (!%p106_p3), %s528_s25, 3 }
  0x32   : > { %s112_s27 = scalar_lea.sflag (!%p106_p3), [#allocation5], %s528_s25  ;;  %s115_s28 = scalar_lea.vmem (!%p106_p3), [#allocation4], %s250_s26 }
  0x38   : > { %380 = dma.done.wait (%p466_p6), %s112_s27, 128  }
  0x39   : > { %382 = vsyncadd (%p466_p6), %s112_s27, 4294967168  ;;  %v138_v0 = vlaneseq  ;;  %s134_s29 = sld [smem:[#allocation3]]  ;;  %s252_s30 = sshll.u32 %s444_s0, 10  ;;  %v157_v15 = vld [vmem:[%s115_s28] sm:$0xff] }
  0x3a   : > { %s133_s21 = scalar_lea.vmem [#allocation7], %s250_s26  ;;  %s256_s6 = sshll.u32 %s444_s0, 7 }
  0x3b   : > { %v139_v1 = vshrl.u32 %v138_v0, 7  ;;  %v141_v2 = vand.u32 127, %v138_v0  ;;  %s174_s5 = sshll.u32 %s133_s21, 4  ;;  %s543_s9 = scalar_lea.hbm %s587_s2, %s256_s6  ;;  %s538_s5 = int_to_ptr.vmem [resolvable:$true] %s174_s5 }
  0x3c   : > { %s161_s10 = scalar_lea.sflag [#allocation6], %s528_s25  ;;  %s335_s15 = scalar_lea.vmem %s538_s5, 128 }
  0x3d   : > { %v142_v3 = vmul.u32 128, %v139_v1  ;;  %p336_p6 = scmp.ne.s32.totalorder %s538_s5, %s335_s15  ;;  %p596_p11 = scmp.ne.s32.totalorder %s591_s22, 0 }
  0x3e   : > { %s404_s0 = smov [#allocation7]  }
  0x3f   : > { %s135_s3 = smul.u32 2654435769, %s134_s29  ;;  %v143_v4 = vadd.s32 %v142_v3, %v141_v2  ;;  %p337_p12 = pnand %p336_p6, %p596_p11 }
  0x40   : > { %s339_s17 = sshll.u32 %s404_s0, 4  ;;  %s340_s17 = int_to_ptr.vmem [resolvable:$false] %s339_s17 }
  0x41   : > { %s137_s4 = sadd.s32 %s252_s30, %s135_s3  ;;  %p338_p13 = pneg %p337_p12 }
  0x42   : > { %v144_v5 = vstv %s137_s4  ;;  %s341_s18 = scalar_lea.vmem %s340_s17, 256  ;;  %p342_p7 = scmp.lt.s32.totalorder %s538_s5, %s340_s17 }
  0x43   : > { %v145_v6 = vadd.s32 %v144_v5, %v143_v4  ;;  %p343_p10 = scmp.lt.s32.totalorder %s341_s18, %s335_s15 }
  0x45   : > { %v253_v7 = vshrl.u32 %v145_v6, 16  ;;  %p344_p2 = por %p343_p10, %p342_p7 }
  0x47   : > { %v148_v8 = vxor.u32 %v253_v7, %v145_v6  ;;  %p345_p4 = pnand %p344_p2, %p338_p13 }
  0x49   : > { %v149_v9 = vmul.u32 2146121005, %v148_v8 }
  0x4b   : > { %v254_v10 = vshrl.u32 %v149_v9, 15 }
  0x4d   : > { %v152_v11 = vxor.u32 %v254_v10, %v149_v9 }
  0x4f   : > { %v153_v12 = vmul.u32 2221713035, %v152_v11 }
  0x51   : > { %v154_v13 = vand.u32 8388607, %v153_v12 }
  0x53   : > { %v155_v14 = vcvt.s32.f32 %v154_v13 }
  0x55   : > { %v156_v16 = vmul.f32 4.656613e-10, %v155_v14 }
  0x57   : > { %v158_v17 = vadd.f32 %v157_v15, %v156_v16 }
  0x59   : > { %159 = vst [vmem:[%s133_s21] sm:$0xff] %v158_v17 }
  0x5a   : > { %348 = shalt.err (!%p345_p4)
}
  0x5b   : > { %s349_s20 = scalar_lea.hbm %s543_s9, 128  ;;  %s353_s26 = scalar_lea.hbm %s587_s2, 256 }
  0x5c   : > { %p350_p5 = scmp.ne.s32.totalorder %s543_s9, %s349_s20  ;;  %p354_p0 = scmp.lt.u32.totalorder %s543_s9, %s587_s2 }
  0x5d   : > { %p355_p1 = scmp.lt.u32.totalorder %s353_s26, %s349_s20  ;;  %p357_p6 = scmp.lt.u32.totalorder %s349_s20, %s543_s9 }
  0x5e   : > { %p351_p8 = pnand %p350_p5, %p596_p11 }
  0x5f   : > { %p356_p3 = por %p355_p1, %p354_p0 }
  0x60   : > { %p352_p9 = pneg %p351_p8 }
  0x61   : > { %p358_p12 = por %p357_p6, %p356_p3 }
  0x63   : > { %p359_p13 = pnand %p358_p12, %p352_p9 }
  0x65   : > { %362 = shalt.err (!%p359_p13)
}
  0x66   : > { %261 = dma.vmem_to_hbm [thread:$0]  (%p596_p11), %s538_s5, 128, %s543_s9, %s161_s10  }
  0x67 PF: > { %s186_s29 = sand.u32 1, %s389_s11   ;;  %p597_p7 = scmp.ne.s32.totalorder %s592_s23, 0 }
  0x68   : > { %p598_p10 = scmp.ge.s32.totalorder %s401_s14, 2  ;;  %s187_s30 = scalar_lea.sflag [#allocation6], %s186_s29 }
  0x6a   : > { %p268_p2 = pnand %p598_p10, %p597_p7 }
  0x6c   : > { %384 = dma.done.wait (!%p268_p2), %s187_s30, 128  }
  0x6d   : > { %386 = vsyncadd (!%p268_p2), %s187_s30, 4294967168  ;;  %p16_p4 = scmp.ge.s32.totalorder %s448_s16, 4   ;;  %s599_s11 = smov %s393_s12 }
  0x6e   : > { %s600_s12 = smov %s397_s13  ;;  %s601_s13 = smov %s460_s19 }
  0x6f   : > { %s602_s14 = smov %s448_s16  ;;  %18 = sbr.rel (!%p16_p4) target bundleno = 7 (0x7), region = 69 }
  0x76   :  { %192 = vsyncpa [#allocation5], 1 }
  0x77   :  { %194 = vsyncpa [#allocation5 + $0x1], 1 }
  0x78   :  { %195 = vsyncpa [#allocation6], 1 }
  0x79   :  { %197 = vsyncpa [#allocation6 + $0x1], 1 }

</bundles_post_ra>
